<compile_context>
chip_gen: v6e
topology: v6e:2x2x1
jax: 0.10.0
libtpu: 0.0.40
codegen_flags: <defaults>
</compile_context>

<pallas_src>
import functools

import numpy as np

import jax
import jax.numpy as jnp
from jax import lax
from jax.experimental import pallas as pl
from jax.experimental.pallas import tpu as pltpu

_MIB = 1024 * 1024


def _round_up(x, m):
    return ((x + m - 1) // m) * m


def _tpu_vmem_capacity_bytes():
    """Physical VMEM per core; conservative (v7x = 64 MiB) fallback."""
    try:
        cap = int(getattr(pltpu.get_tpu_info(), "vmem_capacity_bytes", 0))
        if cap > 0:
            return cap
    except Exception:
        pass
    return 64 * _MIB


def _device_kind():
    try:
        return jax.devices()[0].device_kind.lower()
    except Exception:
        return ""


def _default_exp_dtype(compute_dtype):
    # bf16 exp only where the EUP is bf16-capable (v6e / v7x); v5e and unknown
    # chips keep f32 (correct everywhere, just not the fast path).
    if compute_dtype == jnp.float32:
        return jnp.float32
    kind = _device_kind()
    if ("v6" in kind) or ("v7" in kind):
        return jnp.bfloat16
    return jnp.float32


def _pick_row_tile(n, batch, fits, candidates=(1024, 512, 256, 128)):
    """Largest multiple-of-128 divisor of n that fits the VMEM budget.

    Falls back to the full extent (always a legal block) for small/odd n.
    """
    cands = [c for c in candidates if c <= n and n % c == 0]  # descending
    tile = None
    for c in cands:
        if fits(c):
            tile = c
            break
    if tile is None:
        tile = cands[-1] if cands else n
    # v7x has 2 TensorCores: keep >= 2 grid items when batch == 1.
    if batch == 1 and tile == n:
        smaller = [c for c in cands if c < n]
        if smaller:
            tile = smaller[0]
    return tile


def _k1_vmem_estimate(tq, c, cqkv, ckp, cbytes, xbytes):
    x_tile = 2 * c * tq * xbytes                 # double-buffered x tile
    w = 2 * cqkv * c * cbytes                    # fused weight (+ revolving buf)
    outs = 2 * (2 * ckp + c) * tq * cbytes       # double-buffered Q/K/V tiles
    temps = 2 * cqkv * tq * 4                    # f32 qkv accumulator temporaries
    return x_tile + w + outs + temps


def _k2_vmem_estimate(tq, n, c, ckp, cbytes, xbytes, attn_bytes, kv_buffers):
    kv = (ckp + c) * n * cbytes * kv_buffers     # resident K + V
    tiles = 2 * (ckp * tq * cbytes + 2 * c * tq * xbytes)   # q, x, out (dbl-buf)
    attn_out = 2 * tq * n * attn_bytes           # attention out tile (dbl-buf)
    temps = 16 * tq * n                          # energy / p / attn live temps
    return kv + tiles + attn_out + temps


# ----------------------------------------------------------------------------
# Kernel 1: fused QKV projection (channels-first)
#   x_ref : (1, C, TQ1)      w_ref : (Cqkv, C)  (pre-transposed fused weight)
#   b_ref : (Cqkv, 1)
#   q_ref/k_ref : (1, Ckp, TQ1)   v_ref : (1, C, TQ1)
# ----------------------------------------------------------------------------
def _qkv_proj_kernel(x_ref, w_ref, b_ref, q_ref, k_ref, v_ref, *, ckp):
    x = x_ref[0].astype(w_ref.dtype)                                   # (C, TQ1)
    # One fused, lane-dense MXU pass producing Q, K and V together (f32 acc).
    qkv = jnp.dot(w_ref[...], x, preferred_element_type=jnp.float32)   # (Cqkv, TQ1)
    qkv = qkv + b_ref[...]
    q_ref[0] = qkv[:ckp, :].astype(q_ref.dtype)                        # aligned row slices
    k_ref[0] = qkv[ckp:2 * ckp, :].astype(k_ref.dtype)
    v_ref[0] = qkv[2 * ckp:, :].astype(v_ref.dtype)


# ----------------------------------------------------------------------------
# Kernel 2: row-tiled attention (one query tile per grid step)
#   q_ref : (1, Ckp, TQ)  k_ref : (1, Ckp, N)  v_ref : (1, C, N)
#   x_ref : (1, C, TQ)    gamma_ref : (1, 1) in SMEM
#   out_refs : out (1, C, TQ) [, attn (1, TQ, N)]
# ----------------------------------------------------------------------------
def _attn_kernel(q_ref, k_ref, v_ref, x_ref, gamma_ref, *out_refs, exp_dtype):
    out_ref = out_refs[0]
    attn_ref = out_refs[1] if len(out_refs) > 1 else None

    q = q_ref[0]                                                        # (Ckp, TQ)
    k = k_ref[0]                                                        # (Ckp, N)
    # energy[i, j] = <q_:,i , k_:,j>   (lhs-transposed form; only the small
    # (Ckp, TQ) q tile could ever need an explicit relayout)
    energy = lax.dot_general(q, k, (((0,), (0,)), ((), ())),
                             preferred_element_type=jnp.float32)        # (TQ, N)

    # Numerically-stable softmax over the key axis. Exponent optionally in
    # bf16 (v6e/v7x EUP); row-sum + reciprocal stay in f32.
    e_max = jnp.max(energy, axis=-1, keepdims=True)
    p = jnp.exp((energy - e_max).astype(exp_dtype))
    denom = jnp.sum(p.astype(jnp.float32), axis=-1, keepdims=True)
    inv = pl.reciprocal(denom, approx=True)

    # Single cast: this tile is both the stored attention map and the PV operand.
    attn_c = (p * inv.astype(p.dtype)).astype(v_ref.dtype)              # (TQ, N)
    if attn_ref is not None:
        attn_ref[0] = attn_c.astype(attn_ref.dtype)   # no-op cast when dtypes match

    # out[c, i] = sum_j V[c, j] * attn[i, j]   (== torch.bmm(V, attn^T); NT form,
    # big rhs transposed feed is MXU-native, no materialized (TQ,N) transpose)
    out_cn = lax.dot_general(v_ref[0], attn_c, (((1,), (1,)), ((), ())),
                             preferred_element_type=jnp.float32)         # (C, TQ)
    gamma = gamma_ref[0, 0]
    out_ref[0] = (gamma * out_cn + x_ref[0].astype(jnp.float32)).astype(out_ref.dtype)


def self_attn_pallas(x_nchw, wq, bq, wk, bk, wv, bv, gamma, *,
                     compute_dtype=None, attn_dtype=None, exp_dtype=None,
                     q_tile=None, proj_tile=None, return_attention=True,
                     single_buffer_kv=True):
    """Forward pass of Self_Attn.

    x_nchw : (B, C, W, H) feature map (PyTorch NCHW)
    wq/wk  : (C, C//8), bq/bk : (1, C//8)   (1x1 conv weights stored (Cin, Cout))
    wv     : (C, C),    bv    : (1, C)
    gamma  : scalar parameter (any shape reshapable to (1, 1))

    Returns (out (B,C,W,H), attention (B,N,N) or None), N = W*H.
    compute_dtype defaults to bfloat16 (f32 accumulation everywhere); pass
    jnp.float32 for strict-precision semantics.
    """
    B, C, W, H = x_nchw.shape
    N = W * H
    Ck = wq.shape[1]

    if compute_dtype is None:
        compute_dtype = jnp.bfloat16        # MXU-native on every TPU generation
    compute_dtype = np.dtype(compute_dtype)
    attn_dtype = compute_dtype if attn_dtype is None else np.dtype(attn_dtype)
    if exp_dtype is None:
        exp_dtype = _default_exp_dtype(compute_dtype)

    cbytes = compute_dtype.itemsize
    xbytes = np.dtype(x_nchw.dtype).itemsize
    attn_bytes = attn_dtype.itemsize if return_attention else 0

    # ---- parameter prep (tiny, once, in XLA) --------------------------------
    # Pad Q/K channels up to a sublane/packing multiple so the fused projection
    # output splits on aligned row boundaries (16 for bf16 packing, else 8).
    # Zero padding is exact: padded channels contribute 0 to Q.K^T.
    ck_align = 16 if cbytes == 2 else 8
    Ckp = max(ck_align, _round_up(Ck, ck_align))
    Cqkv = 2 * Ckp + C

    def pad_cols(w, b, cout_p):
        wp = jnp.zeros((C, cout_p), w.dtype).at[:, : w.shape[1]].set(w)
        bp = jnp.zeros((cout_p,), b.dtype).at[: b.shape[1]].set(b[0])
        return wp, bp

    wq_p, bq_p = pad_cols(wq, bq, Ckp)
    wk_p, bk_p = pad_cols(wk, bk, Ckp)
    w_fused_t = jnp.concatenate([wq_p, wk_p, wv], axis=1).T.astype(compute_dtype)
    b_fused = jnp.concatenate([bq_p, bk_p, bv[0]], axis=0).astype(jnp.float32)
    b_fused = b_fused.reshape(Cqkv, 1)
    gamma_2d = jnp.asarray(gamma, jnp.float32).reshape(1, 1)

    # Channels-first flat view; pure reshape, no transpose / extra HBM pass.
    x_cn = x_nchw.reshape(B, C, N)

    # ---- generation-aware sizing --------------------------------------------
    vmem_cap = _tpu_vmem_capacity_bytes()                    # 64 MiB v7x / 128 MiB v5e,v6e
    vmem_limit = int(min(max(vmem_cap - 24 * _MIB, 32 * _MIB), 112 * _MIB))
    budget = int(0.8 * vmem_limit)
    kv_buffers = 1 if single_buffer_kv else 2

    if q_tile is None:
        TQ = _pick_row_tile(
            N, B,
            lambda t: _k2_vmem_estimate(t, N, C, Ckp, cbytes, xbytes,
                                        attn_bytes, kv_buffers) <= budget)
    else:
        TQ = int(q_tile)
        assert N % TQ == 0, f"q_tile={TQ} must divide N={N}"
    if proj_tile is None:
        TQ1 = _pick_row_tile(
            N, B,
            lambda t: _k1_vmem_estimate(t, C, Cqkv, Ckp, cbytes, xbytes) <= budget,
            candidates=(2048, 1024, 512, 256, 128))
    else:
        TQ1 = int(proj_tile)
        assert N % TQ1 == 0, f"proj_tile={TQ1} must divide N={N}"

    cparams = pltpu.CompilerParams(
        dimension_semantics=("parallel", "parallel"),
        vmem_limit_bytes=vmem_limit)

    # ---- kernel 1: fused QKV projection (its own, larger row tile) ----------
    grid1 = (B, N // TQ1)
    cost1 = pl.CostEstimate(
        flops=int(2 * B * N * C * Cqkv),
        transcendentals=0,
        bytes_accessed=int(B * C * N * xbytes + Cqkv * C * cbytes
                           + B * N * (2 * Ckp + C) * cbytes))

    q_all, k_all, v_all = pl.pallas_call(
        functools.partial(_qkv_proj_kernel, ckp=Ckp),
        out_shape=(
            jax.ShapeDtypeStruct((B, Ckp, N), compute_dtype),   # Q (channels-first)
            jax.ShapeDtypeStruct((B, Ckp, N), compute_dtype),   # K
            jax.ShapeDtypeStruct((B, C, N), compute_dtype),     # V
        ),
        grid_spec=pltpu.PrefetchScalarGridSpec(
            num_scalar_prefetch=0,
            grid=grid1,
            in_specs=[
                pl.BlockSpec((1, C, TQ1), lambda b, t: (b, 0, t)),   # x tile
                pl.BlockSpec((Cqkv, C), lambda b, t: (0, 0)),        # fused W^T (constant)
                pl.BlockSpec((Cqkv, 1), lambda b, t: (0, 0)),        # fused bias (constant)
            ],
            out_specs=[
                pl.BlockSpec((1, Ckp, TQ1), lambda b, t: (b, 0, t)),
                pl.BlockSpec((1, Ckp, TQ1), lambda b, t: (b, 0, t)),
                pl.BlockSpec((1, C, TQ1), lambda b, t: (b, 0, t)),
            ],
        ),
        compiler_params=cparams,
        cost_estimate=cost1,
    )(x_cn, w_fused_t, b_fused)

    # ---- kernel 2: row-tiled attention --------------------------------------
    grid2 = (B, N // TQ)
    out_dtype = x_nchw.dtype
    cost2 = pl.CostEstimate(
        flops=int(2 * B * N * N * (Ckp + C)),
        transcendentals=int(B * N * N),
        bytes_accessed=int(B * N * (2 * Ckp + C) * cbytes
                           + 2 * B * C * N * xbytes
                           + B * N * N * attn_bytes))

    out_shapes = [jax.ShapeDtypeStruct((B, C, N), out_dtype)]
    out_specs = [pl.BlockSpec((1, C, TQ), lambda b, t: (b, 0, t))]
    if return_attention:
        out_shapes.append(jax.ShapeDtypeStruct((B, N, N), attn_dtype))
        out_specs.append(pl.BlockSpec((1, TQ, N), lambda b, t: (b, t, 0)))

    kernel2 = functools.partial(_attn_kernel, exp_dtype=exp_dtype)

    def run_attention(kv_pipeline_mode):
        kv_kwargs = ({} if kv_pipeline_mode is None
                     else {"pipeline_mode": kv_pipeline_mode})
        return pl.pallas_call(
            kernel2,
            out_shape=tuple(out_shapes),
            grid_spec=pltpu.PrefetchScalarGridSpec(
                num_scalar_prefetch=0,
                grid=grid2,
                in_specs=[
                    pl.BlockSpec((1, Ckp, TQ), lambda b, t: (b, 0, t)),   # Q tile
                    # K / V: constant block index along t -> single-buffered.
                    pl.BlockSpec((1, Ckp, N), lambda b, t: (b, 0, 0), **kv_kwargs),
                    pl.BlockSpec((1, C, N), lambda b, t: (b, 0, 0), **kv_kwargs),
                    pl.BlockSpec((1, C, TQ), lambda b, t: (b, 0, t)),     # x tile (residual)
                    pl.BlockSpec((1, 1), lambda b, t: (0, 0),
                                 memory_space=pltpu.SMEM),                # gamma scalar
                ],
                out_specs=out_specs,
            ),
            compiler_params=cparams,
            cost_estimate=cost2,
        )(q_all, k_all, v_all, x_cn, gamma_2d)

    try:
        if single_buffer_kv:
            results = run_attention(pl.Buffered(1))
        else:
            results = run_attention(None)
    except Exception:
        # Fallback: default (double) buffering if buffer_count=1 is rejected.
        results = run_attention(None)

    out_cn = results[0]
    attn = results[1] if return_attention else None
    return out_cn.reshape(B, C, W, H), attn


# ---------------------------------------------------------------------------
# Pure-JAX reference (mirrors the PyTorch module, f32, highest precision)
# ---------------------------------------------------------------------------
def _reference(x_nchw, wq, bq, wk, bk, wv, bv, gamma):
    B, C, W, H = x_nchw.shape
    N = W * H
    hp = jax.lax.Precision.HIGHEST
    xf = x_nchw.reshape(B, C, N).astype(jnp.float32)
    q = jnp.einsum("ck,bcn->bkn", wq, xf, precision=hp) + bq.reshape(1, -1, 1)
    k = jnp.einsum("ck,bcn->bkn", wk, xf, precision=hp) + bk.reshape(1, -1, 1)
    v = jnp.einsum("cd,bcn->bdn", wv, xf, precision=hp) + bv.reshape(1, -1, 1)
    energy = jnp.einsum("bki,bkj->bij", q, k, precision=hp)        # (B, N, N)
    attn = jax.nn.softmax(energy, axis=-1)
    out = jnp.einsum("bcj,bij->bci", v, attn, precision=hp)        # (B, C, N)
    out = gamma.reshape(()) * out + xf
    return out.reshape(B, C, W, H), attn


if __name__ == "__main__":
    # Small shapes consistent with the module (in_dim must be >= 8: Ck = C // 8).
    B, C, W, H = 2, 16, 8, 8          # N = 64, Ck = 2
    Ck = C // 8

    key = jax.random.PRNGKey(0)
    kx, kq, kk, kv, kbq, kbk, kbv = jax.random.split(key, 7)

    x = jax.random.normal(kx, (B, C, W, H), dtype=jnp.float32)
    scale = 1.0 / (C ** 0.5)
    wq = jax.random.normal(kq, (C, Ck), dtype=jnp.float32) * scale
    wk = jax.random.normal(kk, (C, Ck), dtype=jnp.float32) * scale
    wv = jax.random.normal(kv, (C, C), dtype=jnp.float32) * scale
    bq = jax.random.normal(kbq, (1, Ck), dtype=jnp.float32) * 0.1
    bk = jax.random.normal(kbk, (1, Ck), dtype=jnp.float32) * 0.1
    bv = jax.random.normal(kbv, (1, C), dtype=jnp.float32) * 0.1
    # PyTorch inits gamma = 0; use a nonzero value to exercise the residual path.
    gamma = jnp.full((1, 1), 0.5, dtype=jnp.float32)

    ref_out, ref_attn = _reference(x, wq, bq, wk, bk, wv, bv, gamma)

    # Strict f32 path — only approximation is the EUP reciprocal in the softmax.
    out, attn = self_attn_pallas(x, wq, bq, wk, bk, wv, bv, gamma,
                                 compute_dtype=jnp.float32)
    out = jax.block_until_ready(out)
    attn = jax.block_until_ready(attn)
    assert out.shape == (B, C, W, H) and attn.shape == (B, W * H, W * H)
    assert jnp.allclose(attn, ref_attn, atol=3e-3, rtol=3e-3)
    assert jnp.allclose(out, ref_out, atol=1e-2, rtol=1e-2)

    # Default fast path — bf16 MXU operands (+ bf16 exp on v6e/v7x), f32 acc.
    out_fast, attn_fast = self_attn_pallas(x, wq, bq, wk, bk, wv, bv, gamma)
    out_fast = jax.block_until_ready(out_fast)
    attn_fast = jax.block_until_ready(attn_fast)
    assert jnp.allclose(attn_fast.astype(jnp.float32), ref_attn, atol=5e-2, rtol=5e-2)
    assert jnp.allclose(out_fast.astype(jnp.float32), ref_out, atol=1.5e-1, rtol=1e-1)

    # Bandwidth-saving variant: skip the dominant (B, N, N) attention-map write.
    out_only, attn_none = self_attn_pallas(x, wq, bq, wk, bk, wv, bv, gamma,
                                           return_attention=False)
    out_only = jax.block_until_ready(out_only)
    assert attn_none is None
    assert jnp.allclose(out_only.astype(jnp.float32), ref_out, atol=1.5e-1, rtol=1e-1)

    print("KERNEL_OK")
</pallas_src>

<mosaic_0001>
module attributes {stable_mosaic.version = 11 : i64} {
  func.func @_qkv_proj_kernel(%arg0: i32, %arg1: i32, %arg2: memref<1x16x64xf32, #tpu.memory_space<vmem>>, %arg3: memref<32x16xf32, #tpu.memory_space<vmem>>, %arg4: memref<32x1xf32, #tpu.memory_space<vmem>>, %arg5: memref<1x8x64xf32, #tpu.memory_space<vmem>>, %arg6: memref<1x8x64xf32, #tpu.memory_space<vmem>>, %arg7: memref<1x16x64xf32, #tpu.memory_space<vmem>>) attributes {dimension_semantics = [#tpu.dimension_semantics<parallel>, #tpu.dimension_semantics<parallel>], iteration_bounds = array<i64: 2, 1>, scalar_prefetch = 0 : i64, scratch_operands = 0 : i64, tpu.core_type = #tpu.core_type<tc>, window_params = [{transform_indices = @transform_0, window_bounds = array<i64: 1, 16, 64>}, {pipeline_mode = #tpu.pipeline_mode<synchronous>, transform_indices = @transform_1, window_bounds = array<i64: 32, 16>}, {pipeline_mode = #tpu.pipeline_mode<synchronous>, transform_indices = @transform_2, window_bounds = array<i64: 32, 1>}, {transform_indices = @transform_3, window_bounds = array<i64: 1, 8, 64>}, {transform_indices = @transform_4, window_bounds = array<i64: 1, 8, 64>}, {transform_indices = @transform_5, window_bounds = array<i64: 1, 16, 64>}]} {
    %c0 = arith.constant 0 : index
    %c0_0 = arith.constant 0 : index
    %c0_1 = arith.constant 0 : index
    %0 = vector.load %arg2[%c0, %c0_0, %c0_1] : memref<1x16x64xf32, #tpu.memory_space<vmem>>, vector<1x16x64xf32>
    %1 = vector.shape_cast %0 : vector<1x16x64xf32> to vector<16x64xf32>
    %c0_2 = arith.constant 0 : index
    %c0_3 = arith.constant 0 : index
    %2 = vector.load %arg3[%c0_2, %c0_3] : memref<32x16xf32, #tpu.memory_space<vmem>>, vector<32x16xf32>
    %cst = arith.constant dense<0.000000e+00> : vector<32x64xf32>
    %3 = tpu.matmul %2, %1, %cst {dimension_numbers = #tpu.dot_dimension_numbers<[1], [0], [0], [1], [0, 0, 1, 1], [], []>} : vector<32x16xf32>, vector<16x64xf32>, vector<32x64xf32> -> vector<32x64xf32>
    %c0_4 = arith.constant 0 : index
    %c0_5 = arith.constant 0 : index
    %4 = vector.load %arg4[%c0_4, %c0_5] : memref<32x1xf32, #tpu.memory_space<vmem>>, vector<32x1xf32>
    %5 = vector.broadcast %4 : vector<32x1xf32> to vector<32x64xf32>
    %6 = arith.addf %3, %5 : vector<32x64xf32>
    %7 = vector.extract_strided_slice %6 {offsets = [0, 0], sizes = [8, 64], strides = [1, 1]} : vector<32x64xf32> to vector<8x64xf32>
    %c0_6 = arith.constant 0 : index
    %c0_7 = arith.constant 0 : index
    %c0_8 = arith.constant 0 : index
    %8 = vector.load %arg5[%c0_6, %c0_7, %c0_8] : memref<1x8x64xf32, #tpu.memory_space<vmem>>, vector<1x8x64xf32>
    %9 = vector.shape_cast %8 : vector<1x8x64xf32> to vector<8x64xf32>
    %10 = vector.shape_cast %7 : vector<8x64xf32> to vector<1x8x64xf32>
    tpu.vector_store %arg5[%c0_6, %c0_7, %c0_8], %10 {strides = array<i32>} : memref<1x8x64xf32, #tpu.memory_space<vmem>>, vector<1x8x64xf32>,
    %11 = vector.extract_strided_slice %6 {offsets = [8, 0], sizes = [8, 64], strides = [1, 1]} : vector<32x64xf32> to vector<8x64xf32>
    %c0_9 = arith.constant 0 : index
    %c0_10 = arith.constant 0 : index
    %c0_11 = arith.constant 0 : index
    %12 = vector.load %arg6[%c0_9, %c0_10, %c0_11] : memref<1x8x64xf32, #tpu.memory_space<vmem>>, vector<1x8x64xf32>
    %13 = vector.shape_cast %12 : vector<1x8x64xf32> to vector<8x64xf32>
    %14 = vector.shape_cast %11 : vector<8x64xf32> to vector<1x8x64xf32>
    tpu.vector_store %arg6[%c0_9, %c0_10, %c0_11], %14 {strides = array<i32>} : memref<1x8x64xf32, #tpu.memory_space<vmem>>, vector<1x8x64xf32>,
    %15 = vector.extract_strided_slice %6 {offsets = [16, 0], sizes = [16, 64], strides = [1, 1]} : vector<32x64xf32> to vector<16x64xf32>
    %c0_12 = arith.constant 0 : index
    %c0_13 = arith.constant 0 : index
    %c0_14 = arith.constant 0 : index
    %16 = vector.load %arg7[%c0_12, %c0_13, %c0_14] : memref<1x16x64xf32, #tpu.memory_space<vmem>>, vector<1x16x64xf32>
    %17 = vector.shape_cast %16 : vector<1x16x64xf32> to vector<16x64xf32>
    %18 = vector.shape_cast %15 : vector<16x64xf32> to vector<1x16x64xf32>
    tpu.vector_store %arg7[%c0_12, %c0_13, %c0_14], %18 {strides = array<i32>} : memref<1x16x64xf32, #tpu.memory_space<vmem>>, vector<1x16x64xf32>,
    return
  }
  func.func @transform_0(%arg0: i32, %arg1: i32) -> (i32, i32, i32) {
    %c0_i32 = arith.constant 0 : i32
    %c0_i32_0 = arith.constant 0 : i32
    return %arg0, %c0_i32, %arg1 : i32, i32, i32
  }
  func.func @transform_1(%arg0: i32, %arg1: i32) -> (i32, i32) {
    %c0_i32 = arith.constant 0 : i32
    %c0_i32_0 = arith.constant 0 : i32
    %c0_i32_1 = arith.constant 0 : i32
    return %c0_i32, %c0_i32_0 : i32, i32
  }
  func.func @transform_2(%arg0: i32, %arg1: i32) -> (i32, i32) {
    %c0_i32 = arith.constant 0 : i32
    %c0_i32_0 = arith.constant 0 : i32
    %c0_i32_1 = arith.constant 0 : i32
    return %c0_i32, %c0_i32_0 : i32, i32
  }
  func.func @transform_3(%arg0: i32, %arg1: i32) -> (i32, i32, i32) {
    %c0_i32 = arith.constant 0 : i32
    %c0_i32_0 = arith.constant 0 : i32
    return %arg0, %c0_i32, %arg1 : i32, i32, i32
  }
  func.func @transform_4(%arg0: i32, %arg1: i32) -> (i32, i32, i32) {
    %c0_i32 = arith.constant 0 : i32
    %c0_i32_0 = arith.constant 0 : i32
    return %arg0, %c0_i32, %arg1 : i32, i32, i32
  }
  func.func @transform_5(%arg0: i32, %arg1: i32) -> (i32, i32, i32) {
    %c0_i32 = arith.constant 0 : i32
    %c0_i32_0 = arith.constant 0 : i32
    return %arg0, %c0_i32, %arg1 : i32, i32, i32
  }
}

</mosaic_0001>

<bundles_post_ra>
// kernel: tpu_custom_call.1
= control target key start
LH: loop header
LB: loop body
LE: loop exit
PB: predicated region body
PF: predicated region fallthrough
CT: control target
= control target key end

     0   :  { %s1109_s0 = inlined_call_operand.vmem [shape: f32[2,16,64], index: 0, kind: input, shape index: {}]   ;;  %s1110_s1 = inlined_call_operand.vmem [shape: f32[32,16], index: 1, kind: input, shape index: {}]   ;;  %s1111_s2 = inlined_call_operand.vmem [shape: f32[32,1], index: 2, kind: input, shape index: {}]   ;;  %s1112_s3 = inlined_call_operand.hbm [shape: f32[2,8,64], index: 3, kind: output, shape index: {0}]   ;;  %s1113_s4 = inlined_call_operand.hbm [shape: f32[2,8,64], index: 4, kind: output, shape index: {1}]   ;;  %s1114_s5 = inlined_call_operand.hbm [shape: f32[2,16,64], index: 5, kind: output, shape index: {2}]  }
   0x1   :  { %1116 = sst [smem:[#allocation9_spill]] %s1109_s0 }
   0x2   :  { %1117 = sst [smem:[#allocation10_spill]] %s1110_s1 }
   0x3   :  { %1118 = sst [smem:[#allocation11_spill]] %s1111_s2 }
   0x4   :  { %11 = vsyncpa [#allocation3], 0 }
   0x5   :  { %13 = vsyncpa [#allocation3 + $0x1], 0 }
   0x6   :  { %14 = vsyncpa [#allocation5], 0 }
   0x7   :  { %16 = vsyncpa [#allocation5 + $0x1], 0  ;;  %s882_s18 = smov 0   ;;  %s884_s19 = smov 0  }
   0x8   :  { %s886_s20 = smov 0   ;;  %s888_s21 = smov 0  }
   0x9   :  { %s890_s22 = smov 0   ;;  %s892_s23 = smov 0  }
   0xa LB: > { %s597_s24 = sadd.s32 4294967295, %s844_s23   ;;  %s1115_s25 = sadd.s32 4294967294, %s844_s23   ;;  %s844_s23 = sphi %s892_s23, %s22_s23   ;;  %s840_s22 = sphi %s890_s22, %s1131_s22   ;;  %s836_s21 = sphi %s888_s21, %s1130_s21   ;;  %s832_s20 = sphi %s886_s20, %s1129_s20   ;;  %s828_s19 = sphi %s884_s19, %s1128_s19   ;;  %s824_s18 = sphi %s882_s18, %s1127_s18  }
   0xb   : > { %s34_s26 = sadd.s32 1, %s840_s22  ;;  %s113_s27 = sadd.s32 1, %s832_s20 }
   0xc   : > { %p36_p0 = scmp.ge.s32.totalorder %s34_s26, 2  ;;  %p123_p1 = scmp.ne.s32.totalorder %s832_s20, %s828_s19 }
   0xd   : > { %p124_p2 = scmp.eq.s32.totalorder %s597_s24, 1  ;;  %p129_p3 = scmp.ne.s32.totalorder %s828_s19, %s824_s18 }
   0xe   : > { %s1133_s26 = smov (%p36_p0, %s34_s26), 0  ;;  %p130_p5 = scmp.eq.s32.totalorder %s1115_s25, 1 }
   0xf   : > { %p924_p4 = por %p124_p2, %p123_p1  ;;  %s108_s29 = ssub.s32 %s840_s22, %s1133_s26 }
  0x10   : > { %p601_p6 = scmp.ge.s32.totalorder %s844_s23, 1  ;;  %p111_p7 = scmp.eq.s32.totalorder %s108_s29, 0 }
  0x11   : > { %p933_p8 = por %p130_p5, %p129_p3  ;;  %p221_p9 = scmp.lt.s32.totalorder %s844_s23, 3 }
  0x12   : > { %s939_s6 = scalar_select %p111_p7, %s832_s20, %s113_s27  }
  0x13   : > { %p222_p10 = pnand %p601_p6, %p221_p9 }
  0x14   : > { %p262_p11 = scmp.lt.s32.totalorder (!%p222_p10), %s836_s21, 1  ;;  %s1121_s1 = sld [smem:[#allocation10_spill]] (!%p222_p10) }
  0x15   : > { %225 = sbr.rel (%p222_p10) target bundleno = 288 (0x120), region = 32  ;;  %s1122_s2 = sld [smem:[#allocation11_spill]] (!%p222_p10) }
  0x16   : > { %s1123_s0 = sld [smem:[#allocation9_spill]] (!%p222_p10)  ;;  %s984_s7 = sand.u32 (!%p222_p10), 1, %s597_s24  }
  0x17   : > { %s614_s8 = sshll.u32 (!%p222_p10), %s836_s21, 7  ;;  %s621_s13 = sshll.u32 (!%p222_p10), %s836_s21, 8 }
  0x18   : > { %s996_s24 = scalar_lea.hbm (!%p222_p10), %s1113_s4, %s614_s8 }
  0x1a   : > { %v272_v0 = vld [vmem:[%s1121_s1] sm:$0xff]  ;;  %vm300_vm0 = vcmask 130048   ;;  %v274_v1 = vld [vmem:[%s1121_s1 + $0x10] sm:$0xff]  ;;  %s263_s15 = scalar_select %p262_p11, %s836_s21, 1  ;;  %v846_v4 = vmov 0   ;;  %v273_v7 = vld [vmem:[%s1121_s1 + $0x8] sm:$0xff] }
  0x1b   : > { %632 = vmatprep.mubr.msk.f32.mxu0 %vm300_vm0, %v272_v0  ;;  %635 = vmatprep.mubr.msk.f32.mxu1 %vm300_vm0, %v274_v1  ;;  %v278_v2 = vld [vmem:[%s1122_s2 + $0x10] sm:$0xff]  ;;  %v277_v3 = vld [vmem:[%s1122_s2 + $0x8] sm:$0xff]  ;;  %v275_v8 = vld [vmem:[%s1121_s1 + $0x18] sm:$0xff]  ;;  %vm398_vm1 = vcmask 523264   ;;  %s1003_s21 = scalar_lea.hbm %s1112_s3, %s614_s8  ;;  %s847_s8 = smov [#allocation4]  }
  0x1c   : > { %711 = vset.pattern.permute.xlu1 %v846_v4  ;;  %710 = vset.pattern.permute.xlu0 %v846_v4  ;;  %s620_s16 = sshll.u32 %s263_s15, 4  ;;  %v279_v9 = vld [vmem:[%s1122_s2 + $0x18] sm:$0xff]  ;;  %v276_v10 = vld [vmem:[%s1122_s2] sm:$0xff]  ;;  %s975_s15 = sand.u32 1, %s828_s19  }
  0x1d   : > { %292 = vperm.xlu1 %711, %v278_v2   ;;  %287 = vperm.xlu0 %710, %v277_v3   ;;  %s269_s29 = scalar_lea.vmem %s1123_s0, %s620_s16  ;;  %s604_s16 = sshll.u32 %s975_s15, 4 }
  0x1e   : > { %v271_v5 = vld [vmem:[%s269_s29 + $0x8] sm:$0xff]  ;;  %v270_v6 = vld [vmem:[%s269_s29] sm:$0xff]  ;;  %s602_s17 = sshll.u32 %s975_s15, 3  ;;  %s979_s27 = scalar_lea.vmem [#allocation6], %s604_s16 }
  0x1f   : > { %628 = vmatprep.subr.mxu0 %v271_v5  ;;  %638 = vmatprep.subr.mxu1 %v271_v5  ;;  %s456_s29 = sshll.u32 %s979_s27, 4  ;;  %s254_s9 = scalar_lea.vmem [#allocation4], %s602_s17  ;;  %s987_s29 = int_to_ptr.vmem [resolvable:$true] %s456_s29 }
  0x20   : > { %629 = vmatpush3.msra.mxu0 %v271_v5  ;;  %640 = vmatpush3.msra.mxu1 %v271_v5  ;;  %s442_s10 = sshll.u32 %s254_s9, 4  ;;  %s989_s11 = scalar_lea.vmem [#allocation2], %s602_s17  ;;  %s998_s10 = int_to_ptr.vmem [resolvable:$true] %s442_s10 }
  0x21   : > { %630 = vmatprep.subr.mxu0 %v270_v6  ;;  %639 = vmatprep.subr.mxu1 %v270_v6  ;;  %s428_s12 = sshll.u32 %s989_s11, 4  ;;  %s1010_s0 = scalar_lea.hbm %s1114_s5, %s621_s13  ;;  %s1005_s12 = int_to_ptr.vmem [resolvable:$true] %s428_s12 }
  0x22   : > { %631 = vmatpush3.msra.mxu0 %v270_v6  ;;  %641 = vmatpush3.msra.mxu1 %v270_v6  ;;  %s712_s25 = scalar_lea.vmem %s998_s10, 128  ;;  %s716_s17 = sshll.u32 %s847_s8, 4  ;;  %s717_s17 = int_to_ptr.vmem [resolvable:$false] %s716_s17 }
  0x23   : > { %633 = vmatmul.mubr.msk.f32.vlgmr.msra.gmra.mxu0 %vm300_vm0, %v273_v7  ;;  %636 = vmatmul.mubr.msk.f32.vlgmr.msra.gmra.mxu1 %vm300_vm0, %v275_v8  ;;  %p713_p12 = scmp.ne.s32.totalorder %s998_s10, %s712_s25  ;;  %s718_s2 = scalar_lea.vmem %s717_s17, 256 }
  0x24   : > { %297 = vperm.xlu1 %711, %v279_v9   ;;  %282 = vperm.xlu0 %710, %v276_v10   ;;  %p719_p1 = scmp.lt.s32.totalorder %s998_s10, %s717_s17  ;;  %p720_p2 = scmp.lt.s32.totalorder %s718_s2, %s712_s25 }
  0x25   : > { %p714_p13 = pnand %p713_p12, %p924_p4 }
  0x26   : > { %p721_p3 = por %p720_p2, %p719_p1 }
  0x27   : > { %p715_p0 = pneg %p714_p13 }
  0x29   : > { %p722_p5 = pnand %p721_p3, %p715_p0 }
  0x98   : > { %v293_v11 = vpop.permute.xlu1 %292  ;;  %v288_v12 = vpop.permute.xlu0 %287 }
  0x9f   : > { %v298_v13 = vpop.permute.xlu1 %297  ;;  %v283_v16 = vpop.permute.xlu0 %282 }
  0xe3   : > { %v634_v14 = vpop.f32.mrf.mxu0  ;;  %v637_v15 = vpop.f32.mrf.mxu1 }
  0xe4   : > { %v385_v17 = vadd.f32 %v634_v14, %v288_v12  ;;  %v395_v18 = vadd.f32 %v637_v15, %v298_v13 }
  0xe5   : > { %v379_v19 = vpop.f32.mrf.mxu0  ;;  %v389_v20 = vpop.f32.mrf.mxu1 }
  0xe6   : > { %402 = vst.msk [vmem:[%s979_s27 + $0x8] sm:$0xff] %vm398_vm1, %v395_v18  ;;  %v380_v21 = vadd.f32 %v379_v19, %v283_v16  ;;  %v390_v22 = vadd.f32 %v389_v20, %v293_v11  ;;  %400 = vst.msk [vmem:[%s254_s9] sm:$0xff] %vm398_vm1, %v385_v17 }
  0xe7   : > { %725 = shalt.err (!%p722_p5)
}
  0xe8   : > { %s726_s9 = scalar_lea.hbm %s996_s24, 128  ;;  %s730_s16 = scalar_lea.hbm %s1113_s4, 256 }
  0xe9   : > { %p727_p6 = scmp.ne.s32.totalorder %s996_s24, %s726_s9  ;;  %p731_p10 = scmp.lt.s32.totalorder %s996_s24, %s1113_s4 }
  0xea   : > { %p732_p11 = scmp.lt.s32.totalorder %s730_s16, %s726_s9 }
  0xeb   : > { %p728_p7 = pnand %p727_p6, %p924_p4 }
  0xec   : > { %p733_p12 = por %p732_p11, %p731_p10 }
  0xed   : > { %p729_p9 = pneg %p728_p7 }
  0xef   : > { %p734_p13 = pnand %p733_p12, %p729_p9 }
  0xf1   : > { %737 = shalt.err (!%p734_p13)
}
  0xf2   : > { %s1124_s2 = scalar_lea.sflag [#allocation5], %s984_s7  ;;  %401 = vst.msk [vmem:[%s979_s27] sm:$0xff] %vm398_vm1, %v390_v22  ;;  %399 = vst.msk [vmem:[%s989_s11] sm:$0xff] %vm398_vm1, %v380_v21  ;;  %s404_s1 = scalar_lea.sflag [#allocation3], %s975_s15 }
  0xf3   : > { %643 = dma.vmem_to_hbm [thread:$0]  (%p924_p4), %s998_s10, 128, %s996_s24, %s1124_s2  }
  0xf4   : > { %s738_s25 = scalar_lea.vmem %s1005_s12, 128  ;;  %s848_s17 = smov [#allocation2]  }
  0xf5   : > { %p739_p0 = scmp.ne.s32.totalorder %s1005_s12, %s738_s25  ;;  %s742_s9 = sshll.u32 %s848_s17, 4  ;;  %s743_s9 = int_to_ptr.vmem [resolvable:$false] %s742_s9 }
  0xf6   : > { %s744_s13 = scalar_lea.vmem %s743_s9, 256  ;;  %p745_p3 = scmp.lt.s32.totalorder %s1005_s12, %s743_s9 }
  0xf7   : > { %p740_p1 = pnand %p739_p0, %p924_p4  ;;  %p746_p5 = scmp.lt.s32.totalorder %s744_s13, %s738_s25 }
  0xf9   : > { %p741_p2 = pneg %p740_p1  ;;  %p747_p6 = por %p746_p5, %p745_p3 }
  0xfb   : > { %p748_p7 = pnand %p747_p6, %p741_p2 }
  0xfd   : > { %751 = shalt.err (!%p748_p7)
}
  0xfe   : > { %s752_s27 = scalar_lea.hbm %s1003_s21, 128  ;;  %s756_s11 = scalar_lea.hbm %s1112_s3, 256 }
  0xff   : > { %p753_p9 = scmp.ne.s32.totalorder %s1003_s21, %s752_s27  ;;  %p757_p12 = scmp.lt.s32.totalorder %s1003_s21, %s1112_s3 }
 0x100   : > { %p758_p13 = scmp.lt.s32.totalorder %s756_s11, %s752_s27 }
 0x101   : > { %p754_p10 = pnand %p753_p9, %p924_p4 }
 0x102   : > { %p759_p0 = por %p758_p13, %p757_p12 }
 0x103   : > { %p755_p11 = pneg %p754_p10 }
 0x105   : > { %p760_p1 = pnand %p759_p0, %p755_p11 }
 0x107   : > { %763 = shalt.err (!%p760_p1)
}
 0x108   : > { %642 = dma.vmem_to_hbm [thread:$0]  (%p924_p4), %s1005_s12, 128, %s1003_s21, %s404_s1  }
 0x109   : > { %s764_s16 = scalar_lea.vmem %s987_s29, 256  ;;  %s849_s8 = smov [#allocation6]  }
 0x10a   : > { %p765_p2 = scmp.ne.s32.totalorder %s987_s29, %s764_s16  ;;  %s768_s2 = sshll.u32 %s849_s8, 4  ;;  %s769_s2 = int_to_ptr.vmem [resolvable:$false] %s768_s2 }
 0x10b   : > { %s770_s25 = scalar_lea.vmem %s769_s2, 512  ;;  %p771_p6 = scmp.lt.s32.totalorder %s987_s29, %s769_s2 }
 0x10c   : > { %p766_p3 = pnand %p765_p2, %p924_p4  ;;  %p772_p7 = scmp.lt.s32.totalorder %s770_s25, %s764_s16 }
 0x10e   : > { %p767_p5 = pneg %p766_p3  ;;  %p773_p9 = por %p772_p7, %p771_p6 }
 0x110   : > { %p774_p10 = pnand %p773_p9, %p767_p5 }
 0x112   : > { %777 = shalt.err (!%p774_p10)
}
 0x113   : > { %s778_s17 = scalar_lea.hbm %s1010_s0, 256  ;;  %s782_s1 = scalar_lea.hbm %s1114_s5, 512 }
 0x114   : > { %p779_p11 = scmp.ne.s32.totalorder %s1010_s0, %s778_s17  ;;  %p783_p0 = scmp.lt.s32.totalorder %s1010_s0, %s1114_s5 }
 0x115   : > { %p784_p1 = scmp.lt.s32.totalorder %s782_s1, %s778_s17 }
 0x116   : > { %p780_p12 = pnand %p779_p11, %p924_p4 }
 0x117   : > { %p785_p2 = por %p784_p1, %p783_p0 }
 0x118   : > { %p781_p13 = pneg %p780_p12 }
 0x11a   : > { %p786_p3 = pnand %p785_p2, %p781_p13 }
 0x11c   : > { %789 = shalt.err (!%p786_p3)
}
 0x11d   : > { %s850_s27 = smov 128   ;;  %s851_s15 = smov 8  }
 0x11e   : > { %s1125_s10 = scalar_lea.sflag [#allocation5], %s984_s7 }
 0x11f   : > { %644 = dma.vmem_to_hbm [thread:$0]  (%p924_p4), %s987_s29, 256, %s1010_s0, %s1125_s10, %s850_s27, %s850_s27, %s851_s15  }
 0x120 PF: > { %p658_p5 = scmp.ge.s32.totalorder %s844_s23, 2  ;;  %s471_s11 = sand.u32 1, %s824_s18  }
 0x121   : > { %s472_s24 = scalar_lea.sflag [#allocation3], %s471_s11 }
 0x122   : > { %p649_p6 = pnand %p658_p5, %p933_p8 }
 0x124   : > { %p650_p7 = pneg %p649_p6 }
 0x126   : > { %815 = dma.done.wait (%p650_p7), %s472_s24, 128  }
 0x127   : > { %817 = vsyncadd (%p650_p7), %s472_s24, 4294967168  ;;  %s1126_s14 = sadd.s32 4294967294, %s844_s23  }
 0x128   : > { %s480_s16 = sand.u32 1, %s1126_s14  }
 0x129   : > { %s481_s8 = scalar_lea.sflag [#allocation5], %s480_s16 }
 0x12a   : > { %819 = dma.done.wait (%p650_p7), %s481_s8, 384  }
 0x12b   : > { %821 = vsyncadd (%p650_p7), %s481_s8, 4294966912  ;;  %s22_s23 = sadd.s32 1, %s844_s23   ;;  %s1127_s18 = smov %s828_s19 }
 0x12c   : > { %p19_p4 = scmp.ge.s32.totalorder %s22_s23, 4   ;;  %s1128_s19 = smov %s832_s20 }
 0x12d   : > { %s1129_s20 = smov %s939_s6  ;;  %s1130_s21 = smov %s840_s22 }
 0x12e   : > { %s1131_s22 = smov %s1133_s26  ;;  %21 = sbr.rel (!%p19_p4) target bundleno = 10 (0xa), region = 99 }
 0x133   :  { %495 = vsyncpa [#allocation3], 1 }
 0x134   :  { %497 = vsyncpa [#allocation3 + $0x1], 1 }
 0x135   :  { %498 = vsyncpa [#allocation5], 1 }
 0x136   :  { %500 = vsyncpa [#allocation5 + $0x1], 1 }

</bundles_post_ra>
